<compile_context>
chip_gen: v6e
topology: v6e:2x2x1
jax: 0.10.0
libtpu: 0.0.40
codegen_flags: <defaults>
</compile_context>

<pallas_src>
import jax
import jax.numpy as jnp
from jax.experimental import pallas as pl
from jax.experimental.pallas import tpu as pltpu


def _round_up(n, m):
    return ((n + m - 1) // m) * m


def _nbytes(a):
    return a.size * a.dtype.itemsize


def post_refine_kernel(xin_ref, w1_ref, b1_ref, w2_ref, b2_ref,
                       xxy_ref, x1xy_ref, out_ref):
    # Layer 1: single merged K=64 bf16 MXU matmul (f32 accumulation) + bias.
    h = jnp.dot(xin_ref[...], w1_ref[...],
                preferred_element_type=jnp.float32) + b1_ref[...]
    # ReLU fused with the bf16 downcast: only the bf16 hidden is materialized.
    h = jnp.maximum(h, 0.0).astype(w2_ref.dtype)
    # TODO(synk): nn.Dropout(0.5) is identity in the eval/inference forward; no RNG mask.

    # Layer 2 (+ bias).
    logits = jnp.dot(h, w2_ref[...],
                     preferred_element_type=jnp.float32) + b2_ref[...]

    # Sigmoid: EUP exp + exact reciprocal (EUP is nowhere near the bottleneck).
    score = pl.reciprocal(1.0 + jnp.exp(-logits), approx=False)

    # Blend fused as x1 + s*(x - x1); operands/output stay f32.
    x1_xy = x1xy_ref[...]
    out_ref[...] = x1_xy + score * (xxy_ref[...] - x1_xy)


def prepare_params(w1, b1, w2, b2, *, T, V, compute_dtype=jnp.bfloat16):
    """One-time (init-time) parameter preprocessing — not in the per-call hot path.

    w1: (T*V*5, fc_unit), b1: (fc_unit,), w2: (fc_unit, fc_out), b2: (fc_out,),
    i.e. weights already in `x @ W` orientation (torch weight transposed).
    """
    fc_in, fc_unit = w1.shape
    fc_out = w2.shape[1]
    assert fc_in == T * V * 5 and fc_out == T * V * 2

    # W1 keeps the natural cat((x, x_1), -1) row order; zero-pad K to a
    # 64-multiple (bf16 sublane-pack friendly) so layer 1 is one MXU matmul.
    k_pad = _round_up(fc_in, 64)
    w1_p = jnp.zeros((k_pad, fc_unit), compute_dtype).at[:fc_in, :].set(
        w1.astype(compute_dtype))

    # Lane-dense pad of W2/b2 columns only when fc_out is large; for tiny fc_out
    # (< 128) keep the natural width so the xy/output HBM streams are not 8x'd.
    out_w = fc_out if fc_out < 128 else _round_up(fc_out, 128)
    w2_p = jnp.zeros((fc_unit, out_w), compute_dtype).at[:, :fc_out].set(
        w2.astype(compute_dtype))
    b2_p = jnp.zeros((1, out_w), jnp.float32).at[:, :fc_out].set(
        b2.reshape(1, fc_out).astype(jnp.float32))

    return dict(
        w1=w1_p, b1=b1.reshape(1, fc_unit).astype(jnp.float32),
        w2=w2_p, b2=b2_p,
        fc_in=fc_in, k_pad=k_pad, fc_unit=fc_unit,
        fc_out=fc_out, out_w=out_w,
    )


def post_refine_forward(x, x_1, params, *, block_m=1024):
    """x: (N, T, V, 3), x_1: (N, T, V, 2) -> x_out: (N, T, V, 3)."""
    N, T, V, _ = x.shape
    fc_in, k_pad = params["fc_in"], params["k_pad"]
    fc_unit = params["fc_unit"]
    fc_out, out_w = params["fc_out"], params["out_w"]
    assert fc_in == T * V * 5

    # Batch tile: biggest multiple-of-8 tile that fits block_m, but keep >= 2
    # grid steps when there are enough rows so v7x's two TensorCores both get
    # work on the "parallel" axis; v5e/v6e just see fewer, bigger steps.
    bm_full = _round_up(N, 8)
    bm_half = _round_up(-(-N // 2), 8)
    bm = min(block_m, bm_full, max(bm_half, 8))
    n_pad = _round_up(N, bm)
    grid = (n_pad // bm,)

    def pad2d(a, rows, cols):
        r, c = a.shape
        if r == rows and c == cols:
            return a
        return jnp.pad(a, ((0, rows - r), (0, cols - c)))

    # Matmul LHS streamed as bf16 (halves those HBM bytes); the torch
    # cat((x, x_1), -1).view(N, -1) is a tiny one-time XLA op here.
    x_in = jnp.concatenate((x, x_1), axis=-1).reshape(N, fc_in).astype(jnp.bfloat16)
    x_in = pad2d(x_in, n_pad, k_pad)
    # Blend operands / output stay f32 and at natural width (out_w == fc_out
    # when fc_out < 128 -> no 8x lane padding of these streams in HBM).
    x_xy = pad2d(x[..., :2].reshape(N, fc_out).astype(jnp.float32), n_pad, out_w)
    x1_xy = pad2d(x_1.reshape(N, fc_out).astype(jnp.float32), n_pad, out_w)

    w1, b1, w2, b2 = params["w1"], params["b1"], params["w2"], params["b2"]

    def row_spec(cols):          # batch-tiled activations / output
        return pl.BlockSpec((bm, cols), lambda i: (i, 0))

    def const_spec(shape):       # VMEM-resident weights / biases (DMA'd once)
        # NOTE: pl.Buffered(1) would halve their resident footprint; omitted
        # since the weights are tiny here and double-buffer slack is budgeted.
        return pl.BlockSpec(shape, lambda i: (0, 0))

    # VMEM budget: resident weights (x2 double-buffer slack) + double-buffered
    # activation tiles + hidden-activation temporaries + headroom; floor 16 MiB,
    # cap 48 MiB (stays under v7x's 64 MiB/TC physical VMEM).
    weight_bytes = sum(_nbytes(a) for a in (w1, b1, w2, b2))
    act_bytes = 2 * bm * (k_pad * 2 + 3 * out_w * 4)
    hidden_bytes = bm * fc_unit * (4 + 2)
    need = 2 * weight_bytes + act_bytes + hidden_bytes + (4 << 20)
    vmem_limit = int(min(max(need, 16 << 20), 48 << 20))

    out_xy = pl.pallas_call(
        post_refine_kernel,
        out_shape=jax.ShapeDtypeStruct((n_pad, out_w), jnp.float32),
        grid=grid,
        in_specs=[
            row_spec(k_pad),                  # x_in  (bf16, merged cat)   per-tile
            const_spec((k_pad, fc_unit)),     # W1    (bf16, K-padded)     resident
            const_spec((1, fc_unit)),         # b1    (f32)                resident
            const_spec((fc_unit, out_w)),     # W2    (bf16)               resident
            const_spec((1, out_w)),           # b2    (f32)                resident
            row_spec(out_w),                  # x[..., :2]   (f32)         per-tile
            row_spec(out_w),                  # x_1[..., :2] (f32)         per-tile
        ],
        out_specs=row_spec(out_w),
        compiler_params=pltpu.CompilerParams(
            dimension_semantics=("parallel",),
            vmem_limit_bytes=vmem_limit),
    )(x_in, w1, b1, w2, b2, x_xy, x1_xy)

    # Glue: un-pad, restore (N, T, V, 2), and stitch the untouched z coordinate.
    out_xy = out_xy[:N, :fc_out].reshape(N, T, V, 2)
    return jnp.concatenate((out_xy, x[..., 2:].astype(jnp.float32)), axis=-1)


if __name__ == "__main__":
    # Small shapes consistent with the module: out_seqlen = T = 1, n_joints = V = 8,
    # in_channels = 2  ->  fc_in = T*V*5 = 40, fc_out = T*V*2 = 16, fc_unit = 1024.
    N, T, V = 2, 1, 8
    fc_in = T * V * 5
    fc_unit = 1024
    fc_out = T * V * 2

    key = jax.random.PRNGKey(0)
    k_x, k_x1, k_w1, k_b1, k_w2, k_b2 = jax.random.split(key, 6)

    x = jax.random.normal(k_x, (N, T, V, 3), dtype=jnp.float32)
    x_1 = jax.random.normal(k_x1, (N, T, V, 2), dtype=jnp.float32)

    # Deterministic synthetic parameters (stored as (in, out) since kernel does x @ W).
    w1 = 0.05 * jax.random.normal(k_w1, (fc_in, fc_unit), dtype=jnp.float32)
    b1 = 0.05 * jax.random.normal(k_b1, (fc_unit,), dtype=jnp.float32)
    w2 = 0.05 * jax.random.normal(k_w2, (fc_unit, fc_out), dtype=jnp.float32)
    b2 = 0.05 * jax.random.normal(k_b2, (fc_out,), dtype=jnp.float32)

    # One-time parameter prep (bf16 weights, K-padded W1, natural-width W2/b2).
    params = prepare_params(w1, b1, w2, b2, T=T, V=V)

    fwd = jax.jit(lambda a, b: post_refine_forward(a, b, params))
    out = fwd(x, x_1)
    jax.block_until_ready(out)

    # Pure-JAX f32 reference (same math as the torch module, no Pallas).
    x_in = jnp.concatenate((x, x_1), axis=-1).reshape(N, -1)
    h = jnp.maximum(x_in @ w1 + b1, 0.0)
    score = jax.nn.sigmoid(h @ w2 + b2).reshape(N, T, V, 2)
    ref = x.at[..., :2].set(score * x[..., :2] + (1.0 - score) * x_1[..., :2])

    # bf16 weights + bf16 LHS streaming => looser tolerance than the f32 path.
    err = float(jnp.max(jnp.abs(out - ref)))
    assert err < 2e-2, f"mismatch vs reference: max abs err {err}"

    print("KERNEL_OK")
</pallas_src>

<mosaic_0001>
module attributes {stable_mosaic.version = 11 : i64} {
  func.func @post_refine_kernel(%arg0: i32, %arg1: memref<8x64xbf16, #tpu.memory_space<vmem>>, %arg2: memref<64x1024xbf16, #tpu.memory_space<vmem>>, %arg3: memref<1x1024xf32, #tpu.memory_space<vmem>>, %arg4: memref<1024x16xbf16, #tpu.memory_space<vmem>>, %arg5: memref<1x16xf32, #tpu.memory_space<vmem>>, %arg6: memref<8x16xf32, #tpu.memory_space<vmem>>, %arg7: memref<8x16xf32, #tpu.memory_space<vmem>>, %arg8: memref<8x16xf32, #tpu.memory_space<vmem>>) attributes {dimension_semantics = [#tpu.dimension_semantics<parallel>], iteration_bounds = array<i64: 1>, scalar_prefetch = 0 : i64, scratch_operands = 0 : i64, tpu.core_type = #tpu.core_type<tc>, window_params = [{transform_indices = @transform_0, window_bounds = array<i64: 8, 64>}, {pipeline_mode = #tpu.pipeline_mode<synchronous>, transform_indices = @transform_1, window_bounds = array<i64: 64, 1024>}, {pipeline_mode = #tpu.pipeline_mode<synchronous>, transform_indices = @transform_2, window_bounds = array<i64: 1, 1024>}, {pipeline_mode = #tpu.pipeline_mode<synchronous>, transform_indices = @transform_3, window_bounds = array<i64: 1024, 16>}, {pipeline_mode = #tpu.pipeline_mode<synchronous>, transform_indices = @transform_4, window_bounds = array<i64: 1, 16>}, {transform_indices = @transform_5, window_bounds = array<i64: 8, 16>}, {transform_indices = @transform_6, window_bounds = array<i64: 8, 16>}, {transform_indices = @transform_7, window_bounds = array<i64: 8, 16>}]} {
    %c0 = arith.constant 0 : index
    %c0_0 = arith.constant 0 : index
    %0 = vector.load %arg1[%c0, %c0_0] : memref<8x64xbf16, #tpu.memory_space<vmem>>, vector<8x64xbf16>
    %c0_1 = arith.constant 0 : index
    %c0_2 = arith.constant 0 : index
    %1 = vector.load %arg2[%c0_1, %c0_2] : memref<64x1024xbf16, #tpu.memory_space<vmem>>, vector<64x1024xbf16>
    %cst = arith.constant dense<0.000000e+00> : vector<8x1024xf32>
    %2 = tpu.matmul %0, %1, %cst {dimension_numbers = #tpu.dot_dimension_numbers<[1], [0], [0], [1], [0, 0, 1, 1], [], []>} : vector<8x64xbf16>, vector<64x1024xbf16>, vector<8x1024xf32> -> vector<8x1024xf32>
    %c0_3 = arith.constant 0 : index
    %c0_4 = arith.constant 0 : index
    %3 = vector.load %arg3[%c0_3, %c0_4] : memref<1x1024xf32, #tpu.memory_space<vmem>>, vector<1x1024xf32>
    %4 = vector.broadcast %3 : vector<1x1024xf32> to vector<8x1024xf32>
    %5 = arith.addf %2, %4 : vector<8x1024xf32>
    %cst_5 = arith.constant 0.000000e+00 : f32
    %6 = vector.broadcast %cst_5 : f32 to vector<8x1024xf32>
    %7 = arith.maximumf %5, %6 : vector<8x1024xf32>
    %8 = arith.truncf %7 : vector<8x1024xf32> to vector<8x1024xbf16>
    %c0_6 = arith.constant 0 : index
    %c0_7 = arith.constant 0 : index
    %9 = vector.load %arg4[%c0_6, %c0_7] : memref<1024x16xbf16, #tpu.memory_space<vmem>>, vector<1024x16xbf16>
    %cst_8 = arith.constant dense<0.000000e+00> : vector<8x16xf32>
    %10 = tpu.matmul %8, %9, %cst_8 {dimension_numbers = #tpu.dot_dimension_numbers<[1], [0], [0], [1], [0, 0, 1, 1], [], []>} : vector<8x1024xbf16>, vector<1024x16xbf16>, vector<8x16xf32> -> vector<8x16xf32>
    %c0_9 = arith.constant 0 : index
    %c0_10 = arith.constant 0 : index
    %11 = vector.load %arg5[%c0_9, %c0_10] : memref<1x16xf32, #tpu.memory_space<vmem>>, vector<1x16xf32>
    %12 = vector.broadcast %11 : vector<1x16xf32> to vector<8x16xf32>
    %13 = arith.addf %10, %12 : vector<8x16xf32>
    %cst_11 = arith.constant 0.000000e+00 : f32
    %14 = vector.broadcast %cst_11 : f32 to vector<8x16xf32>
    %15 = arith.subf %14, %13 : vector<8x16xf32>
    %16 = math.exp %15 : vector<8x16xf32>
    %cst_12 = arith.constant 1.000000e+00 : f32
    %17 = vector.broadcast %cst_12 : f32 to vector<8x16xf32>
    %18 = arith.addf %17, %16 : vector<8x16xf32>
    %19 = tpu.reciprocal %18 : vector<8x16xf32> -> vector<8x16xf32>
    %c0_13 = arith.constant 0 : index
    %c0_14 = arith.constant 0 : index
    %20 = vector.load %arg7[%c0_13, %c0_14] : memref<8x16xf32, #tpu.memory_space<vmem>>, vector<8x16xf32>
    %c0_15 = arith.constant 0 : index
    %c0_16 = arith.constant 0 : index
    %21 = vector.load %arg6[%c0_15, %c0_16] : memref<8x16xf32, #tpu.memory_space<vmem>>, vector<8x16xf32>
    %22 = arith.subf %21, %20 : vector<8x16xf32>
    %23 = arith.mulf %19, %22 : vector<8x16xf32>
    %24 = arith.addf %20, %23 : vector<8x16xf32>
    %c0_17 = arith.constant 0 : index
    %c0_18 = arith.constant 0 : index
    %25 = vector.load %arg8[%c0_17, %c0_18] : memref<8x16xf32, #tpu.memory_space<vmem>>, vector<8x16xf32>
    tpu.vector_store %arg8[%c0_17, %c0_18], %24 {strides = array<i32>} : memref<8x16xf32, #tpu.memory_space<vmem>>, vector<8x16xf32>,
    return
  }
  func.func @transform_0(%arg0: i32) -> (i32, i32) {
    %c0_i32 = arith.constant 0 : i32
    %c0_i32_0 = arith.constant 0 : i32
    return %arg0, %c0_i32 : i32, i32
  }
  func.func @transform_1(%arg0: i32) -> (i32, i32) {
    %c0_i32 = arith.constant 0 : i32
    %c0_i32_0 = arith.constant 0 : i32
    %c0_i32_1 = arith.constant 0 : i32
    return %c0_i32, %c0_i32_0 : i32, i32
  }
  func.func @transform_2(%arg0: i32) -> (i32, i32) {
    %c0_i32 = arith.constant 0 : i32
    %c0_i32_0 = arith.constant 0 : i32
    %c0_i32_1 = arith.constant 0 : i32
    return %c0_i32, %c0_i32_0 : i32, i32
  }
  func.func @transform_3(%arg0: i32) -> (i32, i32) {
    %c0_i32 = arith.constant 0 : i32
    %c0_i32_0 = arith.constant 0 : i32
    %c0_i32_1 = arith.constant 0 : i32
    return %c0_i32, %c0_i32_0 : i32, i32
  }
  func.func @transform_4(%arg0: i32) -> (i32, i32) {
    %c0_i32 = arith.constant 0 : i32
    %c0_i32_0 = arith.constant 0 : i32
    %c0_i32_1 = arith.constant 0 : i32
    return %c0_i32, %c0_i32_0 : i32, i32
  }
  func.func @transform_5(%arg0: i32) -> (i32, i32) {
    %c0_i32 = arith.constant 0 : i32
    %c0_i32_0 = arith.constant 0 : i32
    return %arg0, %c0_i32 : i32, i32
  }
  func.func @transform_6(%arg0: i32) -> (i32, i32) {
    %c0_i32 = arith.constant 0 : i32
    %c0_i32_0 = arith.constant 0 : i32
    return %arg0, %c0_i32 : i32, i32
  }
  func.func @transform_7(%arg0: i32) -> (i32, i32) {
    %c0_i32 = arith.constant 0 : i32
    %c0_i32_0 = arith.constant 0 : i32
    return %arg0, %c0_i32 : i32, i32
  }
}

</mosaic_0001>

<bundles_post_ra>
// kernel: _lambda_.1
= control target key start
LH: loop header
LB: loop body
LE: loop exit
PB: predicated region body
PF: predicated region fallthrough
CT: control target
= control target key end

     0   :  { %12 = vsyncpa [#allocation3], 0  ;;  %s1578_s0 = inlined_call_operand.vmem [shape: bf16[8,64], index: 0, kind: input, shape index: {}]   ;;  %s1579_s1 = inlined_call_operand.hbm [shape: bf16[64,1024], index: 1, kind: input, shape index: {}]   ;;  %s1580_s2 = inlined_call_operand.vmem [shape: f32[1,1024], index: 2, kind: input, shape index: {}]   ;;  %s1581_s3 = inlined_call_operand.hbm [shape: bf16[1024,16], index: 3, kind: input, shape index: {}]   ;;  %s1582_s4 = inlined_call_operand.vmem [shape: f32[1,16], index: 4, kind: input, shape index: {}]   ;;  %s1583_s5 = inlined_call_operand.vmem [shape: f32[8,16], index: 5, kind: input, shape index: {}]   ;;  %s1584_s6 = inlined_call_operand.vmem [shape: f32[8,16], index: 6, kind: input, shape index: {}]   ;;  %s1585_s7 = inlined_call_operand.vmem [shape: f32[8,16], index: 7, kind: output, shape index: {}]  }
   0x1   :  { %13 = vsyncpa [#allocation5], 0  ;;  %s1479_s24 = smov [#allocation2]  }
   0x2   :  { %s21_s25 = sshll.u32 %s1479_s24, 4  ;;  %s22_s25 = int_to_ptr.vmem [resolvable:$true] %s21_s25 }
   0x3   :  { %s1443_s26 = scalar_lea.vmem %s22_s25, 4096  ;;  %p1448_p1 = scmp.lt.s32.totalorder %s22_s25, %s22_s25 }
   0x4   :  { %p1444_p0 = scmp.ne.s32.totalorder %s22_s25, %s1443_s26  ;;  %p1449_p2 = scmp.lt.s32.totalorder %s1443_s26, %s1443_s26 }
   0x6   :  { %p1450_p3 = por %p1449_p2, %p1448_p1 }
   0x8   :  { %p1451_p4 = pnand %p1450_p3, %p1444_p0 }
   0xa   :  { %1454 = shalt.err (!%p1451_p4)
}
   0xb   :  { %s1480_s27 = smov 512   ;;  %s1481_s28 = smov 32  }
   0xc   :  { %27 = dma.hbm_to_vmem [thread:$0]  %s1579_s1, 4096, %s22_s25, [#allocation3], %s1480_s27, %s1480_s27, %s1481_s28  }
   0xd   :  { %s1482_s8 = smov [#allocation4]  }
   0xe   :  { %s35_s9 = sshll.u32 %s1482_s8, 4  ;;  %s36_s9 = int_to_ptr.vmem [resolvable:$true] %s35_s9 }
   0xf   :  { %s1463_s10 = scalar_lea.vmem %s36_s9, 8192  ;;  %p1468_p6 = scmp.lt.s32.totalorder %s36_s9, %s36_s9 }
  0x10   :  { %p1464_p5 = scmp.ne.s32.totalorder %s36_s9, %s1463_s10  ;;  %p1469_p7 = scmp.lt.s32.totalorder %s1463_s10, %s1463_s10 }
  0x12   :  { %p1470_p8 = por %p1469_p7, %p1468_p6 }
  0x14   :  { %p1471_p9 = pnand %p1470_p8, %p1464_p5 }
  0x16   :  { %1474 = shalt.err (!%p1471_p9)
}
  0x17   :  { %s1483_s11 = smov 64   ;;  %s1484_s12 = smov 4  }
  0x18   :  { %41 = dma.hbm_to_vmem [thread:$0]  %s1581_s3, 8192, %s36_s9, [#allocation5], %s1483_s11, %s1483_s11, %s1484_s12  }
  0x19   :  { %1475 = dma.done.wait [#allocation3], 4096  }
  0x1a   :  { %1476 = vsyncadd [#allocation3], 4294963200 }
  0x1b   :  { %1477 = dma.done.wait [#allocation5], 8192  }
  0x1c   :  { %1478 = vsyncadd [#allocation5], 4294959104  ;;  %v1485_v0 = vmov 0   ;;  %v80_v1 = vld [vmem:[#allocation2 + $0xc0] sm:$0xff]  ;;  %v81_v3 = vld [vmem:[#allocation2 + $0xc8] sm:$0xff]  ;;  %vm290_vm0 = vcmask 523264  }
  0x1d   :  { %326 = vmatprep.mubr.bf16.mxu0 %v1485_v0  ;;  %367 = vmatprep.mubr.bf16.mxu1 %v1485_v0  ;;  %v84_v2 = vld [vmem:[#allocation2 + $0xe0] sm:$0xff]  ;;  %v85_v5 = vld [vmem:[#allocation2 + $0xe8] sm:$0xff]  ;;  %v82_v31 = vld [vmem:[#allocation2 + $0xd0] sm:$0xff]  ;;  %vm1163_vm1 = vcmask 130048  }
  0x1e   :  { %v1196_v4 = vcombine.high %v80_v1, %v84_v2  ;;  %v1195_v6 = vcombine.low %v80_v1, %v84_v2  ;;  %v72_v7 = vld [vmem:[#allocation2 + $0x80] sm:$0xff]  ;;  %v1198_v9 = vcombine.high %v81_v3, %v85_v5  ;;  %v1197_v10 = vcombine.low %v81_v3, %v85_v5  ;;  %v73_v12 = vld [vmem:[#allocation2 + $0x88] sm:$0xff]  ;;  %v86_v32 = vld [vmem:[#allocation2 + $0xf0] sm:$0xff] }
  0x1f   :  { %v76_v8 = vld [vmem:[#allocation2 + $0xa0] sm:$0xff]  ;;  %v77_v13 = vld [vmem:[#allocation2 + $0xa8] sm:$0xff]  ;;  %v83_v33 = vld [vmem:[#allocation2 + $0xd8] sm:$0xff]  ;;  %v1200_v38 = vcombine.high %v82_v31, %v86_v32  ;;  %v1199_v44 = vcombine.low %v82_v31, %v86_v32 }
  0x20   :  { %v1188_v11 = vcombine.high %v72_v7, %v76_v8  ;;  %v64_v14 = vld [vmem:[#allocation2 + $0x40] sm:$0xff]  ;;  %302 = vmatprep.subr.bf16.mxu0 %v1196_v4  ;;  %v1190_v15 = vcombine.high %v73_v12, %v77_v13  ;;  %v65_v17 = vld [vmem:[#allocation2 + $0x48] sm:$0xff]  ;;  %343 = vmatprep.subr.bf16.mxu1 %v1198_v9  ;;  %v1187_v19 = vcombine.low %v72_v7, %v76_v8  ;;  %v87_v34 = vld [vmem:[#allocation2 + $0xf8] sm:$0xff] }
  0x21   :  { %v68_v16 = vld [vmem:[#allocation2 + $0x60] sm:$0xff]  ;;  %v69_v18 = vld [vmem:[#allocation2 + $0x68] sm:$0xff]  ;;  %303 = vmatpush1.bf16.msra.mxu0 %v1195_v6  ;;  %344 = vmatpush1.bf16.msra.mxu1 %v1197_v10  ;;  %v1189_v20 = vcombine.low %v73_v12, %v77_v13  ;;  %v74_v36 = vld [vmem:[#allocation2 + $0x90] sm:$0xff]  ;;  %v1202_v41 = vcombine.high %v83_v33, %v87_v34  ;;  %v1201_v46 = vcombine.low %v83_v33, %v87_v34 }
  0x22   :  { %304 = vmatprep.subr.bf16.mxu0 %v1188_v11  ;;  %v1180_v21 = vcombine.high %v64_v14, %v68_v16  ;;  %345 = vmatprep.subr.bf16.mxu1 %v1190_v15  ;;  %v1182_v22 = vcombine.high %v65_v17, %v69_v18  ;;  %v56_v23 = vld [vmem:[#allocation2] sm:$0xff]  ;;  %v57_v25 = vld [vmem:[#allocation2 + $0x8] sm:$0xff]  ;;  %v1179_v27 = vcombine.low %v64_v14, %v68_v16  ;;  %v78_v39 = vld [vmem:[#allocation2 + $0xb0] sm:$0xff] }
  0x23   :  { %v60_v24 = vld [vmem:[#allocation2 + $0x20] sm:$0xff]  ;;  %v61_v26 = vld [vmem:[#allocation2 + $0x28] sm:$0xff]  ;;  %v1181_v28 = vcombine.low %v65_v17, %v69_v18  ;;  %v75_v42 = vld [vmem:[#allocation2 + $0x98] sm:$0xff]  ;;  %v1192_v47 = vcombine.high %v74_v36, %v78_v39  ;;  %v1191_v52 = vcombine.low %v74_v36, %v78_v39  ;;  %v90_v36 = vlaneseq }
  0x24   :  { %v1172_v29 = vcombine.high %v56_v23, %v60_v24  ;;  %v1174_v30 = vcombine.high %v57_v25, %v61_v26  ;;  %v1171_v35 = vcombine.low %v56_v23, %v60_v24  ;;  %v1173_v37 = vcombine.low %v57_v25, %v61_v26  ;;  %v55_v40 = vld [vmem:[%s1578_s0] sm:$0xf]  ;;  %v79_v43 = vld [vmem:[#allocation2 + $0xb8] sm:$0xff]  ;;  %v66_v45 = vld [vmem:[#allocation2 + $0x50] sm:$0xff] }
  0x25   :  { %305 = vmatpush1.bf16.msra.mxu0 %v1187_v19  ;;  %346 = vmatpush1.bf16.msra.mxu1 %v1189_v20  ;;  %v70_v48 = vld [vmem:[#allocation2 + $0x70] sm:$0xff]  ;;  %v1194_v49 = vcombine.high %v75_v42, %v79_v43  ;;  %v67_v50 = vld [vmem:[#allocation2 + $0x58] sm:$0xff]  ;;  %v1193_v54 = vcombine.low %v75_v42, %v79_v43  ;;  %v1375_v10 = vld [vmem:[#allocation4 + $0x68] sm:$0xff]  }
  0x26   :  { %306 = vmatprep.subr.bf16.mxu0 %v1180_v21  ;;  %347 = vmatprep.subr.bf16.mxu1 %v1182_v22  ;;  %v71_v51 = vld [vmem:[#allocation2 + $0x78] sm:$0xff]  ;;  %v58_v53 = vld [vmem:[#allocation2 + $0x10] sm:$0xff]  ;;  %v1184_v55 = vcombine.high %v66_v45, %v70_v48  ;;  %v1183_v60 = vcombine.low %v66_v45, %v70_v48  ;;  %v1376_v11 = vld [vmem:[#allocation4 + $0xe8] sm:$0xff]  }
  0x27   :  { %v62_v56 = vld [vmem:[#allocation2 + $0x30] sm:$0xff]  ;;  %v1186_v57 = vcombine.high %v67_v50, %v71_v51  ;;  %v59_v58 = vld [vmem:[#allocation2 + $0x18] sm:$0xff]  ;;  %v1185_v61 = vcombine.low %v67_v50, %v71_v51  ;;  %v1377_v12 = vld [vmem:[#allocation4 + $0x28] sm:$0xff]  }
  0x28   :  { %v63_v59 = vld [vmem:[#allocation2 + $0x38] sm:$0xff]  ;;  %v1176_v62 = vcombine.high %v58_v53, %v62_v56  ;;  %v1175_v1 = vcombine.low %v58_v53, %v62_v56  ;;  %v1372_v7 = vld [vmem:[#allocation4 + $0xf0] sm:$0xff]   ;;  %v1378_v13 = vld [vmem:[#allocation4 + $0xa8] sm:$0xff]  }
  0x29   :  { %307 = vmatpush1.bf16.msra.mxu0 %v1179_v27  ;;  %348 = vmatpush1.bf16.msra.mxu1 %v1181_v28  ;;  %v1178_v63 = vcombine.high %v59_v58, %v63_v59  ;;  %v1367_v2 = vld [vmem:[#allocation4 + $0x78] sm:$0xff]   ;;  %v1177_v3 = vcombine.low %v59_v58, %v63_v59  ;;  %v1373_v8 = vld [vmem:[#allocation4 + $0x30] sm:$0xff]   ;;  %v1379_v14 = vld [vmem:[#allocation4 + $0x60] sm:$0xff]  }
  0x2a   :  { %308 = vmatprep.subr.bf16.mxu0 %v1172_v29  ;;  %349 = vmatprep.subr.bf16.mxu1 %v1174_v30  ;;  %v1368_v4 = vld [vmem:[#allocation4 + $0xf8] sm:$0xff]   ;;  %v1374_v9 = vld [vmem:[#allocation4 + $0xb0] sm:$0xff]   ;;  %v1380_v15 = vld [vmem:[#allocation4 + $0xe0] sm:$0xff]  }
  0x2b   :  { %v1369_v5 = vld [vmem:[#allocation4 + $0x38] sm:$0xff]   ;;  %v1381_v16 = vld [vmem:[#allocation4 + $0x20] sm:$0xff]   ;;  %v1387_v22 = vld [vmem:[#allocation4 + $0x50] sm:$0xff]  }
  0x2c   :  { %v1370_v6 = vld [vmem:[#allocation4 + $0xb8] sm:$0xff]   ;;  %v1382_v17 = vld [vmem:[#allocation4 + $0xa0] sm:$0xff]   ;;  %v1388_v23 = vld [vmem:[#allocation4 + $0xd0] sm:$0xff]  }
  0x2d   :  { %309 = vmatpush1.bf16.msra.mxu0 %v1171_v35  ;;  %350 = vmatpush1.bf16.msra.mxu1 %v1173_v37  ;;  %v1383_v18 = vld [vmem:[#allocation4 + $0x58] sm:$0xff]   ;;  %v1389_v24 = vld [vmem:[#allocation4 + $0x10] sm:$0xff]   ;;  %v1391_v26 = vld [vmem:[#allocation4 + $0x48] sm:$0xff]   ;;  %v1543_v37 = vshrl.u32 %v90_v36, 7 }
  0x2e   :  { %384 = vmatprep.subr.bf16.mxu0 %v1200_v38  ;;  %425 = vmatprep.subr.bf16.mxu1 %v1202_v41  ;;  %v1384_v19 = vld [vmem:[#allocation4 + $0xd8] sm:$0xff]   ;;  %v1390_v25 = vld [vmem:[#allocation4 + $0x90] sm:$0xff]   ;;  %v1392_v27 = vld [vmem:[#allocation4 + $0xc8] sm:$0xff]  }
  0x2f   :  { %v1385_v20 = vld [vmem:[#allocation4 + $0x18] sm:$0xff]   ;;  %v1393_v28 = vld [vmem:[#allocation4 + $0x8] sm:$0xff]   ;;  %v1395_v30 = vld [vmem:[#allocation4 + $0x40] sm:$0xff]   ;;  %v92_v38 = vsub.s32 0, %v1543_v37  ;;  %v96_v41 = vsub.s32 1, %v1543_v37  ;;  %v104_v42 = vsub.s32 3, %v1543_v37 }
  0x30   :  { %1203 = vmatmul.mubr.msk.bf16.vlgmr.msra.gmra.mxu0 %vm290_vm0, %v55_v40  ;;  %1204 = vmatmul.mubr.msk.bf16.vlgmr.msra.gmra.mxu1 %vm290_vm0, %v55_v40  ;;  %v1386_v21 = vld [vmem:[#allocation4 + $0x98] sm:$0xff]   ;;  %v1394_v29 = vld [vmem:[#allocation4 + $0x88] sm:$0xff]   ;;  %v1396_v31 = vld [vmem:[#allocation4 + $0xc0] sm:$0xff]   ;;  %v116_v36 = vsub.s32 6, %v1543_v37 }
  0x31   :  { %385 = vmatpush1.bf16.msra.mxu0 %v1199_v44  ;;  %426 = vmatpush1.bf16.msra.mxu1 %v1201_v46  ;;  %v1397_v32 = vld [vmem:[#allocation4] sm:$0xff]   ;;  %v1399_v34 = vld [vmem:[#allocation4 + $0x178] sm:$0xff]  }
  0x32   :  { %386 = vmatprep.subr.bf16.mxu0 %v1192_v47  ;;  %427 = vmatprep.subr.bf16.mxu1 %v1194_v49  ;;  %v1398_v33 = vld [vmem:[#allocation4 + $0x80] sm:$0xff]   ;;  %v1400_v35 = vld [vmem:[#allocation4 + $0x1f8] sm:$0xff]  }
  0x33   :  { %408 = vmatprep.mubr.bf16.mxu0 %v1485_v0  ;;  %449 = vmatprep.mubr.bf16.mxu1 %v1485_v0  ;;  %v1371_v0 = vld [vmem:[#allocation4 + $0x70] sm:$0xff]   ;;  %v1549_v39 = vld [vmem:[%s1580_s2] sm:$0xff] }
  0x34   :  { %v93_v43 = vrot.slane %v1549_v39, %v92_v38  ;;  %v97_v45 = vrot.slane %v1549_v39, %v96_v41  ;;  %v105_v47 = vrot.slane %v1549_v39, %v104_v42  ;;  %v1418_v41 = vld [vmem:[#allocation4 + $0x198] sm:$0xff]  }
  0x35   :  { %387 = vmatpush1.bf16.msra.mxu0 %v1191_v52  ;;  %428 = vmatpush1.bf16.msra.mxu1 %v1193_v54 }
  0x36   :  { %388 = vmatprep.subr.bf16.mxu0 %v1184_v55  ;;  %429 = vmatprep.subr.bf16.mxu1 %v1186_v57 }
  0x39   :  { %389 = vmatpush1.bf16.msra.mxu0 %v1183_v60  ;;  %430 = vmatpush1.bf16.msra.mxu1 %v1185_v61 }
  0x3a   :  { %390 = vmatprep.subr.bf16.mxu0 %v1176_v62  ;;  %431 = vmatprep.subr.bf16.mxu1 %v1178_v63 }
  0x3d   :  { %391 = vmatpush1.bf16.msra.mxu0 %v1175_v1  ;;  %432 = vmatpush1.bf16.msra.mxu1 %v1177_v3 }
  0x3e   :  { %1272 = vmatprep.subr.bf16.mxu0 %v1367_v2  ;;  %1294 = vmatprep.subr.bf16.mxu1 %v1368_v4  ;;  %v1401_v2 = vld [vmem:[#allocation4 + $0x138] sm:$0xff]  }
  0x40   :  { %1205 = vmatmul.mubr.msk.bf16.vlgmr.msra.gmra.mxu0 %vm290_vm0, %v55_v40  ;;  %1206 = vmatmul.mubr.msk.bf16.vlgmr.msra.gmra.mxu1 %vm290_vm0, %v55_v40  ;;  %v100_v40 = vsub.s32 2, %v1543_v37 }
  0x41   :  { %1273 = vmatpush3.bf16.msra.mxu0 %v1369_v5  ;;  %1295 = vmatpush3.bf16.msra.mxu1 %v1370_v6  ;;  %v1402_v5 = vld [vmem:[#allocation4 + $0x1b8] sm:$0xff]   ;;  %v1403_v6 = vld [vmem:[#allocation4 + $0x170] sm:$0xff]  }
  0x42   :  { %1274 = vmatprep.subr.bf16.mxu0 %v1371_v0  ;;  %1296 = vmatprep.subr.bf16.mxu1 %v1372_v7  ;;  %v101_v44 = vrot.slane %v1549_v39, %v100_v40  ;;  %v1404_v0 = vld [vmem:[#allocation4 + $0x1f0] sm:$0xff]   ;;  %v108_v40 = vsub.s32 4, %v1543_v37 }
  0x43   :  { %v1405_v7 = vld [vmem:[#allocation4 + $0x130] sm:$0xff]  }
  0x45   :  { %1275 = vmatpush3.bf16.msra.mxu0 %v1373_v8  ;;  %1297 = vmatpush3.bf16.msra.mxu1 %v1374_v9  ;;  %v112_v8 = vsub.s32 5, %v1543_v37  ;;  %v1406_v9 = vld [vmem:[#allocation4 + $0x1b0] sm:$0xff]  }
  0x46   :  { %1276 = vmatprep.subr.bf16.mxu0 %v1375_v10  ;;  %1298 = vmatprep.subr.bf16.mxu1 %v1376_v11  ;;  %v1407_v10 = vld [vmem:[#allocation4 + $0x168] sm:$0xff]   ;;  %v120_v11 = vsub.s32 7, %v1543_v37 }
  0x47   :  { %v1424_v37 = vld [vmem:[#allocation4 + $0x1c8] sm:$0xff]  }
  0x49   :  { %1277 = vmatpush3.bf16.msra.mxu0 %v1377_v12  ;;  %1299 = vmatpush3.bf16.msra.mxu1 %v1378_v13  ;;  %v1408_v12 = vld [vmem:[#allocation4 + $0x1e8] sm:$0xff]  }
  0x4a   :  { %1278 = vmatprep.subr.bf16.mxu0 %v1379_v14  ;;  %1300 = vmatprep.subr.bf16.mxu1 %v1380_v15  ;;  %v1409_v13 = vld [vmem:[#allocation4 + $0x128] sm:$0xff]   ;;  %v113_v14 = vrot.slane %v1549_v39, %v112_v8 }
  0x4b   :  { %v1410_v15 = vld [vmem:[#allocation4 + $0x1a8] sm:$0xff]  }
  0x4d   :  { %1279 = vmatpush3.bf16.msra.mxu0 %v1381_v16  ;;  %1301 = vmatpush3.bf16.msra.mxu1 %v1382_v17  ;;  %v1411_v16 = vld [vmem:[#allocation4 + $0x160] sm:$0xff]  }
  0x4e   :  { %1280 = vmatprep.subr.bf16.mxu0 %v1383_v18  ;;  %1302 = vmatprep.subr.bf16.mxu1 %v1384_v19  ;;  %v121_v18 = vrot.slane %v1549_v39, %v120_v11  ;;  %v1412_v19 = vld [vmem:[#allocation4 + $0x1e0] sm:$0xff]  }
  0x51   :  { %1281 = vmatpush3.bf16.msra.mxu0 %v1385_v20  ;;  %1303 = vmatpush3.bf16.msra.mxu1 %v1386_v21 }
  0x52   :  { %1282 = vmatprep.subr.bf16.mxu0 %v1387_v22  ;;  %1304 = vmatprep.subr.bf16.mxu1 %v1388_v23  ;;  %v1413_v22 = vld [vmem:[#allocation4 + $0x120] sm:$0xff]  }
  0x55   :  { %1283 = vmatpush3.bf16.msra.mxu0 %v1389_v24  ;;  %1305 = vmatpush3.bf16.msra.mxu1 %v1390_v25  ;;  %v1414_v25 = vld [vmem:[#allocation4 + $0x1a0] sm:$0xff]  }
  0x56   :  { %1284 = vmatprep.subr.bf16.mxu0 %v1391_v26  ;;  %1306 = vmatprep.subr.bf16.mxu1 %v1392_v27  ;;  %v1415_v26 = vld [vmem:[#allocation4 + $0x158] sm:$0xff]  }
  0x59   :  { %1285 = vmatpush3.bf16.msra.mxu0 %v1393_v28  ;;  %1307 = vmatpush3.bf16.msra.mxu1 %v1394_v29  ;;  %v1416_v29 = vld [vmem:[#allocation4 + $0x1d8] sm:$0xff]  }
  0x5a   :  { %1286 = vmatprep.subr.bf16.mxu0 %v1395_v30  ;;  %1308 = vmatprep.subr.bf16.mxu1 %v1396_v31 }
  0x5d   :  { %1287 = vmatpush3.bf16.msra.mxu0 %v1397_v32  ;;  %1309 = vmatpush3.bf16.msra.mxu1 %v1398_v33 }
  0x5e   :  { %1316 = vmatprep.subr.bf16.mxu0 %v1399_v34  ;;  %1338 = vmatprep.subr.bf16.mxu1 %v1400_v35  ;;  %v1417_v34 = vld [vmem:[#allocation4 + $0x118] sm:$0xff]  }
  0xf0   :  { %v328_v46 = vpop.f32.mrf.mxu0  ;;  %v369_v49 = vpop.f32.mrf.mxu1 }
  0xf1   :  { %v329_v48 = vadd.f32 %v328_v46, %v93_v43  ;;  %v370_v50 = vadd.f32 %v369_v49, %v101_v44  ;;  %v1419_v43 = vld [vmem:[#allocation4 + $0x150] sm:$0xff]   ;;  %v1423_v49 = vld [vmem:[#allocation4 + $0x148] sm:$0xff]  }
  0xf2   :  { %v330_v51 = vpop.f32.mrf.mxu0  ;;  %v371_v53 = vpop.f32.mrf.mxu1  ;;  %v1420_v44 = vld [vmem:[#allocation4 + $0x1d0] sm:$0xff]  }
  0xf3   :  { %v331_v52 = vadd.f32 %v330_v51, %v97_v45  ;;  %v458_v54 = vmax.f32 %v329_v48, 0.0  ;;  %v460_v55 = vmax.f32 %v370_v50, 0.0  ;;  %v372_v56 = vadd.f32 %v371_v53, %v105_v47  ;;  %v1421_v46 = vld [vmem:[#allocation4 + $0x110] sm:$0xff]   ;;  %v1425_v51 = vld [vmem:[#allocation4 + $0x108] sm:$0xff]  }
  0xf4   :  { %v332_v57 = vpop.f32.mrf.mxu0  ;;  %v373_v59 = vpop.f32.mrf.mxu1  ;;  %v117_v45 = vrot.slane %v1549_v39, %v116_v36  ;;  %v109_v47 = vrot.slane %v1549_v39, %v108_v40  ;;  %v1422_v48 = vld [vmem:[#allocation4 + $0x190] sm:$0xff]   ;;  %v1426_v53 = vld [vmem:[#allocation4 + $0x188] sm:$0xff]  }
  0xf5   :  { %v459_v58 = vmax.f32 %v331_v52, 0.0  ;;  %v461_v60 = vmax.f32 %v372_v56, 0.0  ;;  %v468_v62 = vpack.c.bf16 %v460_v55, %v460_v55  ;;  %v466_v3 = vpack.c.bf16 %v458_v54, %v458_v54  ;;  %v1427_v54 = vld [vmem:[#allocation4 + $0x140] sm:$0xff]  }
  0xf6   :  { %v333_v61 = vpop.f32.mrf.mxu0  ;;  %v374_v1 = vpop.f32.mrf.mxu1  ;;  %v1428_v55 = vld [vmem:[#allocation4 + $0x1c0] sm:$0xff]  }
  0xf7   :  { %v467_v63 = vpack.c.bf16 %v459_v58, %v459_v58  ;;  %v469_v4 = vpack.c.bf16 %v461_v60, %v461_v60  ;;  %v1429_v57 = vld [vmem:[#allocation4 + $0x100] sm:$0xff]  }
  0xf8   :  { %v1430_v58 = vld [vmem:[#allocation4 + $0x180] sm:$0xff]  }
  0xf9   :  { %1025 = vmatprep.mubr.bf16.mxu0 %v467_v63  ;;  %1065 = vmatprep.mubr.bf16.mxu1 %v469_v4 }
  0xfa   :  { %1026 = vmatmul.mubr.bf16.vlgmr.msra.gmra.mxu0 %v466_v3  ;;  %1066 = vmatmul.mubr.bf16.vlgmr.msra.gmra.mxu1 %v468_v62 }
  0xfb   :  { %1317 = vmatpush3.bf16.msra.mxu0 %v1401_v2  ;;  %1339 = vmatpush3.bf16.msra.mxu1 %v1402_v5 }
  0xfc   :  { %1318 = vmatprep.subr.bf16.mxu0 %v1403_v6  ;;  %1340 = vmatprep.subr.bf16.mxu1 %v1404_v0  ;;  %v1207_v0 = vld [vmem:[%s1582_s4] ss:$0 sm:$0xff] }
  0xff   :  { %1319 = vmatpush3.bf16.msra.mxu0 %v1405_v7  ;;  %1341 = vmatpush3.bf16.msra.mxu1 %v1406_v9 }
 0x100   :  { %1320 = vmatprep.subr.bf16.mxu0 %v1407_v10  ;;  %v410_v17 = vpop.f32.mrf.mxu0  ;;  %1342 = vmatprep.subr.bf16.mxu1 %v1408_v12  ;;  %v451_v20 = vpop.f32.mrf.mxu1 }
 0x101   :  { %v452_v50 = vadd.f32 %v451_v20, %v117_v45  ;;  %v411_v52 = vadd.f32 %v410_v17, %v109_v47 }
 0x102   :  { %v412_v21 = vpop.f32.mrf.mxu0  ;;  %v453_v24 = vpop.f32.mrf.mxu1 }
 0x103   :  { %1321 = vmatpush3.bf16.msra.mxu0 %v1409_v13  ;;  %v413_v23 = vadd.f32 %v412_v21, %v113_v14  ;;  %1343 = vmatpush3.bf16.msra.mxu1 %v1410_v15  ;;  %v454_v28 = vadd.f32 %v453_v24, %v121_v18  ;;  %v464_v56 = vmax.f32 %v452_v50, 0.0  ;;  %v462_v39 = vmax.f32 %v411_v52, 0.0 }
 0x104   :  { %1322 = vmatprep.subr.bf16.mxu0 %v1411_v16  ;;  %v414_v27 = vpop.f32.mrf.mxu0  ;;  %1344 = vmatprep.subr.bf16.mxu1 %v1412_v19  ;;  %v455_v31 = vpop.f32.mrf.mxu1 }
 0x105   :  { %v463_v30 = vmax.f32 %v413_v23, 0.0  ;;  %v465_v32 = vmax.f32 %v454_v28, 0.0  ;;  %v472_v59 = vpack.c.bf16 %v464_v56, %v464_v56  ;;  %v470_v60 = vpack.c.bf16 %v462_v39, %v462_v39  ;;  %v1159_v27 = vld [vmem:[%s1583_s5] sm:$0xff] }
 0x106   :  { %v415_v33 = vpop.f32.mrf.mxu0  ;;  %v456_v38 = vpop.f32.mrf.mxu1 }
 0x107   :  { %1323 = vmatpush3.bf16.msra.mxu0 %v1413_v22  ;;  %v471_v35 = vpack.c.bf16 %v463_v30, %v463_v30  ;;  %1345 = vmatpush3.bf16.msra.mxu1 %v1414_v25  ;;  %v473_v42 = vpack.c.bf16 %v465_v32, %v465_v32 }
 0x108   :  { %1324 = vmatprep.subr.bf16.mxu0 %v1415_v26  ;;  %1346 = vmatprep.subr.bf16.mxu1 %v1416_v29  ;;  %v1158_v26 = vld [vmem:[%s1584_s6] sm:$0xff] }
 0x109   :  { %1105 = vmatprep.mubr.bf16.mxu0 %v471_v35  ;;  %1145 = vmatprep.mubr.bf16.mxu1 %v473_v42  ;;  %v1160_v28 = vsub.f32 %v1159_v27, %v1158_v26 }
 0x10b   :  { %1325 = vmatpush3.bf16.msra.mxu0 %v1417_v34  ;;  %1347 = vmatpush3.bf16.msra.mxu1 %v1418_v41 }
 0x10c   :  { %1326 = vmatprep.subr.bf16.mxu0 %v1419_v43  ;;  %1348 = vmatprep.subr.bf16.mxu1 %v1420_v44 }
 0x10f   :  { %1327 = vmatpush3.bf16.msra.mxu0 %v1421_v46  ;;  %1349 = vmatpush3.bf16.msra.mxu1 %v1422_v48 }
 0x110   :  { %1328 = vmatprep.subr.bf16.mxu0 %v1423_v49  ;;  %1350 = vmatprep.subr.bf16.mxu1 %v1424_v37 }
 0x113   :  { %1329 = vmatpush3.bf16.msra.mxu0 %v1425_v51  ;;  %1351 = vmatpush3.bf16.msra.mxu1 %v1426_v53 }
 0x114   :  { %1330 = vmatprep.subr.bf16.mxu0 %v1427_v54  ;;  %1352 = vmatprep.subr.bf16.mxu1 %v1428_v55 }
 0x117   :  { %1331 = vmatpush3.bf16.msra.mxu0 %v1429_v57  ;;  %1353 = vmatpush3.bf16.msra.mxu1 %v1430_v58 }
 0x11a   :  { %1106 = vmatmul.mubr.bf16.vlgmr.msra.gmra.mxu0 %v470_v60  ;;  %1146 = vmatmul.mubr.bf16.vlgmr.msra.gmra.mxu1 %v472_v59 }
 0x1ba   :  { %v1288_v61 = vpop.f32.mrf.mxu0  ;;  %v1310_v62 = vpop.f32.mrf.mxu1 }
 0x1bc   :  { %v1289_v63 = vpop.f32.mrf.mxu0  ;;  %v1311_v1 = vpop.f32.mrf.mxu1 }
 0x1bd   :  { %v1290_v6 = vadd.f32 %v1289_v63, %v1288_v61  ;;  %v1312_v9 = vadd.f32 %v1311_v1, %v1310_v62 }
 0x1be   :  { %v1291_v2 = vpop.f32.mrf.mxu0  ;;  %v1313_v3 = vpop.f32.mrf.mxu1 }
 0x1bf   :  { %v1028_v7 = vadd.f32 %v1290_v6, %v1207_v0 }
 0x1c0   :  { %v1292_v4 = vpop.f32.mrf.mxu0  ;;  %v1314_v5 = vpop.f32.mrf.mxu1 }
 0x1c1   :  { %v1068_v12 = vadd.f32 %v1312_v9, %v1028_v7 }
 0x1da   :  { %v1332_v8 = vpop.f32.mrf.mxu0  ;;  %v1354_v10 = vpop.f32.mrf.mxu1 }
 0x1dc   :  { %v1333_v11 = vpop.f32.mrf.mxu0  ;;  %v1355_v14 = vpop.f32.mrf.mxu1 }
 0x1dd   :  { %v1334_v13 = vadd.f32 %v1333_v11, %v1332_v8  ;;  %v1356_v17 = vadd.f32 %v1355_v14, %v1354_v10 }
 0x1de   :  { %v1335_v15 = vpop.f32.mrf.mxu0  ;;  %v1357_v18 = vpop.f32.mrf.mxu1 }
 0x1df   :  { %v1108_v16 = vadd.f32 %v1334_v13, %v1068_v12 }
 0x1e0   :  { %v1336_v19 = vpop.f32.mrf.mxu0  ;;  %v1358_v21 = vpop.f32.mrf.mxu1 }
 0x1e1   :  { %v1148_v20 = vadd.f32 %v1356_v17, %v1108_v16 }
 0x1e3   :  { %v1153_v22 = vsub.f32 0.0, %v1148_v20 }
 0x1e5   :  { %v1154_v23 = vmul.f32 1.442695, %v1153_v22 }
 0x1e7   :  { %1431 = vpow2.f32 %v1154_v23 }
 0x1f4   :  { %v1432_v24 = vpop.eup %1431 }
 0x1f5   :  { %v1156_v25 = vadd.f32 1.0, %v1432_v24 }
 0x1f7   :  { %1433 = vrcp.f32 %v1156_v25 }
 0x204   :  { %v1434_v29 = vpop.eup %1433 }
 0x205   :  { %v1161_v30 = vmul.f32 %v1434_v29, %v1160_v28 }
 0x207   :  { %v1162_v31 = vadd.f32 %v1161_v30, %v1158_v26 }
 0x209   :  { %1164 = vst.msk [vmem:[%s1585_s7] sm:$0xff] %vm1163_vm1, %v1162_v31 }
 0x20a   :  { %1169 = vsyncpa [#allocation3], 1 }
 0x20b   :  { %1170 = vsyncpa [#allocation5], 1 }

</bundles_post_ra>
